<compile_context>
chip_gen: v7x
topology: tpu7x:2x2x1
jax: 0.10.0
libtpu: 0.0.40
codegen_flags: <defaults>
</compile_context>

<pallas_src>
import math

import jax
import jax.numpy as jnp
from jax.experimental import pallas as pl
from jax.experimental.pallas import tpu as pltpu

KS = 3  # kernel_size == stride for MaxPool2d(kernel_size=3)


def _maxpool_kernel(x_ref, o_ref, wt_ref):
    # x_ref : (NCT, H, W)   input planes, W on the lane axis
    # o_ref : (NCT, OH, OW) pooled output
    # wt_ref: (NCT, W, OH)  VMEM scratch holding the row-reduced block with W on
    #                       sublanes, so the column reduction can also use
    #                       native sublane-strided loads.
    nct, h, w = x_ref.shape
    _, oh, ow = o_ref.shape
    dtype = x_ref.dtype
    neg_inf = jnp.array(-jnp.inf, dtype=dtype)

    # ---- pass 1: max over the KS rows of each window (stride-KS sublane loads)
    row_max = x_ref[:, pl.ds(0, oh, stride=KS), :]          # offset 0 always has OH rows
    for k in range(1, KS):
        cnt = (h - k + KS - 1) // KS                        # valid rows at offset k
        if cnt <= 0:
            continue
        part = x_ref[:, pl.ds(k, cnt, stride=KS), :]        # (NCT, cnt, W)
        if cnt < oh:                                        # ceil_mode tail -> -inf pad
            part = jnp.concatenate(
                [part, jnp.full((nct, oh - cnt, w), neg_inf, dtype)], axis=1)
        row_max = jnp.maximum(row_max, part)                # (NCT, OH, W)

    # on-chip transpose (XLU) so pass 2 is also a sublane-strided reduction
    wt_ref[...] = jnp.swapaxes(row_max, 1, 2)               # (NCT, W, OH)

    # ---- pass 2: max over the KS columns of each window
    col_max = wt_ref[:, pl.ds(0, ow, stride=KS), :]         # (NCT, OW, OH)
    for k in range(1, KS):
        cnt = (w - k + KS - 1) // KS                        # valid cols at offset k
        if cnt <= 0:
            continue
        part = wt_ref[:, pl.ds(k, cnt, stride=KS), :]       # (NCT, cnt, OH)
        if cnt < ow:
            part = jnp.concatenate(
                [part, jnp.full((nct, ow - cnt, oh), neg_inf, dtype)], axis=1)
        col_max = jnp.maximum(col_max, part)                # (NCT, OW, OH)

    # single lane-dense full-block store
    o_ref[...] = jnp.swapaxes(col_max, 1, 2)                # (NCT, OH, OW)


@jax.jit
def maxpool2d_ceil(x_nchw):
    """MaxPool2d(kernel_size=3, ceil_mode=True) on an NCHW float tensor."""
    if not jnp.issubdtype(x_nchw.dtype, jnp.floating):
        raise TypeError(
            f"maxpool2d_ceil expects a floating-point input, got {x_nchw.dtype}")
    n, c, h, w = x_nchw.shape
    oh = math.ceil((h - KS) / KS) + 1     # ceil_mode output size (padding=0)
    ow = math.ceil((w - KS) / KS) + 1

    # Fuse N and C into one plane axis (free reshape: merges leading dims only).
    nc = n * c
    x = x_nchw.reshape(nc, h, w)

    # Fat blocks: several whole (H, W) planes per grid step (~2 MB target),
    # but keep >= 2 grid steps when possible so v7x's 2 TensorCores share work.
    # Double-buffered in/out blocks + scratch stay far below the v7x scoped
    # VMEM budget (~32 MiB) for typical image sizes.  One (H, W) plane is
    # assumed to fit in VMEM.
    slice_bytes = h * w * x.dtype.itemsize
    nc_tile = max(1, min(nc, (2 * 1024 * 1024) // slice_bytes))
    if nc > 1:
        nc_tile = min(nc_tile, -(-nc // 2))   # ceil(nc/2): at least 2 grid steps
    grid0 = -(-nc // nc_tile)

    out = pl.pallas_call(
        _maxpool_kernel,
        out_shape=jax.ShapeDtypeStruct((nc, oh, ow), x.dtype),
        grid=(grid0,),
        in_specs=[
            # last two block dims equal the full array dims -> valid TPU tiling
            pl.BlockSpec((nc_tile, h, w), lambda i: (i, 0, 0)),
        ],
        out_specs=pl.BlockSpec((nc_tile, oh, ow), lambda i: (i, 0, 0)),
        scratch_shapes=[pltpu.VMEM((nc_tile, w, oh), x.dtype)],
        compiler_params=pltpu.CompilerParams(
            dimension_semantics=("parallel",),
        ),
    )(x)

    return out.reshape(n, c, oh, ow)


def _reference(x_nchw):
    n, c, h, w = x_nchw.shape
    oh = math.ceil((h - KS) / KS) + 1
    ow = math.ceil((w - KS) / KS) + 1
    return jax.lax.reduce_window(
        x_nchw,
        -jnp.inf,
        jax.lax.max,
        window_dimensions=(1, 1, KS, KS),
        window_strides=(1, 1, KS, KS),
        padding=((0, 0), (0, 0), (0, oh * KS - h), (0, ow * KS - w)),
    )


if __name__ == "__main__":
    key = jax.random.PRNGKey(0)
    x = jax.random.normal(key, (2, 4, 16, 16), dtype=jnp.float32)  # NCHW

    out = maxpool2d_ceil(x)
    out = jax.block_until_ready(out)

    assert out.shape == (2, 4, 6, 6), out.shape
    ref = _reference(x)
    assert jnp.allclose(out, ref), "Pallas maxpool mismatch vs reference"

    print("KERNEL_OK")
</pallas_src>

<mosaic_0001>
module attributes {stable_mosaic.version = 11 : i64} {
  func.func @_maxpool_kernel(%arg0: i32, %arg1: memref<4x16x16xf32, #tpu.memory_space<vmem>>, %arg2: memref<4x6x6xf32, #tpu.memory_space<vmem>>, %arg3: memref<4x16x6xf32, #tpu.memory_space<vmem>>) attributes {dimension_semantics = [#tpu.dimension_semantics<parallel>], iteration_bounds = array<i64: 2>, scalar_prefetch = 0 : i64, scratch_operands = 1 : i64, tpu.core_type = #tpu.core_type<tc>, window_params = [{transform_indices = @transform_0, window_bounds = array<i64: 4, 16, 16>}, {transform_indices = @transform_1, window_bounds = array<i64: 4, 6, 6>}]} {
    %c0 = arith.constant 0 : index
    %c0_0 = arith.constant 0 : index
    %c0_1 = arith.constant 0 : index
    %0 = tpu.strided_load %arg1[%c0, %c0_0, %c0_1] {strides = array<i32: 1, 3, 1>} : memref<4x16x16xf32, #tpu.memory_space<vmem>>, vector<4x6x16xf32>
    %c0_2 = arith.constant 0 : index
    %c1 = arith.constant 1 : index
    %c0_3 = arith.constant 0 : index
    %1 = tpu.strided_load %arg1[%c0_2, %c1, %c0_3] {strides = array<i32: 1, 3, 1>} : memref<4x16x16xf32, #tpu.memory_space<vmem>>, vector<4x5x16xf32>
    %cst = arith.constant 0xFF800000 : f32
    %2 = vector.broadcast %cst : f32 to vector<4x1x16xf32>
    %3 = tpu.concatenate %1, %2 in 1 : vector<4x5x16xf32>, vector<4x1x16xf32> -> vector<4x6x16xf32>
    %4 = arith.maximumf %0, %3 : vector<4x6x16xf32>
    %c0_4 = arith.constant 0 : index
    %c2 = arith.constant 2 : index
    %c0_5 = arith.constant 0 : index
    %5 = tpu.strided_load %arg1[%c0_4, %c2, %c0_5] {strides = array<i32: 1, 3, 1>} : memref<4x16x16xf32, #tpu.memory_space<vmem>>, vector<4x5x16xf32>
    %cst_6 = arith.constant 0xFF800000 : f32
    %6 = vector.broadcast %cst_6 : f32 to vector<4x1x16xf32>
    %7 = tpu.concatenate %5, %6 in 1 : vector<4x5x16xf32>, vector<4x1x16xf32> -> vector<4x6x16xf32>
    %8 = arith.maximumf %4, %7 : vector<4x6x16xf32>
    %9 = tpu.transpose %8, [0, 2, 1] : vector<4x6x16xf32> -> vector<4x16x6xf32>
    %c0_7 = arith.constant 0 : index
    %c0_8 = arith.constant 0 : index
    %c0_9 = arith.constant 0 : index
    %10 = vector.load %arg3[%c0_7, %c0_8, %c0_9] : memref<4x16x6xf32, #tpu.memory_space<vmem>>, vector<4x16x6xf32>
    tpu.vector_store %arg3[%c0_7, %c0_8, %c0_9], %9 {strides = array<i32>} : memref<4x16x6xf32, #tpu.memory_space<vmem>>, vector<4x16x6xf32>,
    %c0_10 = arith.constant 0 : index
    %c0_11 = arith.constant 0 : index
    %c0_12 = arith.constant 0 : index
    %11 = tpu.strided_load %arg3[%c0_10, %c0_11, %c0_12] {strides = array<i32: 1, 3, 1>} : memref<4x16x6xf32, #tpu.memory_space<vmem>>, vector<4x6x6xf32>
    %c0_13 = arith.constant 0 : index
    %c1_14 = arith.constant 1 : index
    %c0_15 = arith.constant 0 : index
    %12 = tpu.strided_load %arg3[%c0_13, %c1_14, %c0_15] {strides = array<i32: 1, 3, 1>} : memref<4x16x6xf32, #tpu.memory_space<vmem>>, vector<4x5x6xf32>
    %cst_16 = arith.constant 0xFF800000 : f32
    %13 = vector.broadcast %cst_16 : f32 to vector<4x1x6xf32>
    %14 = tpu.concatenate %12, %13 in 1 : vector<4x5x6xf32>, vector<4x1x6xf32> -> vector<4x6x6xf32>
    %15 = arith.maximumf %11, %14 : vector<4x6x6xf32>
    %c0_17 = arith.constant 0 : index
    %c2_18 = arith.constant 2 : index
    %c0_19 = arith.constant 0 : index
    %16 = tpu.strided_load %arg3[%c0_17, %c2_18, %c0_19] {strides = array<i32: 1, 3, 1>} : memref<4x16x6xf32, #tpu.memory_space<vmem>>, vector<4x5x6xf32>
    %cst_20 = arith.constant 0xFF800000 : f32
    %17 = vector.broadcast %cst_20 : f32 to vector<4x1x6xf32>
    %18 = tpu.concatenate %16, %17 in 1 : vector<4x5x6xf32>, vector<4x1x6xf32> -> vector<4x6x6xf32>
    %19 = arith.maximumf %15, %18 : vector<4x6x6xf32>
    %20 = tpu.transpose %19, [0, 2, 1] : vector<4x6x6xf32> -> vector<4x6x6xf32>
    %c0_21 = arith.constant 0 : index
    %c0_22 = arith.constant 0 : index
    %c0_23 = arith.constant 0 : index
    %21 = vector.load %arg2[%c0_21, %c0_22, %c0_23] : memref<4x6x6xf32, #tpu.memory_space<vmem>>, vector<4x6x6xf32>
    tpu.vector_store %arg2[%c0_21, %c0_22, %c0_23], %20 {strides = array<i32>} : memref<4x6x6xf32, #tpu.memory_space<vmem>>, vector<4x6x6xf32>,
    return
  }
  func.func @transform_0(%arg0: i32) -> (i32, i32, i32) {
    %c0_i32 = arith.constant 0 : i32
    %c0_i32_0 = arith.constant 0 : i32
    %c0_i32_1 = arith.constant 0 : i32
    return %arg0, %c0_i32, %c0_i32_0 : i32, i32, i32
  }
  func.func @transform_1(%arg0: i32) -> (i32, i32, i32) {
    %c0_i32 = arith.constant 0 : i32
    %c0_i32_0 = arith.constant 0 : i32
    %c0_i32_1 = arith.constant 0 : i32
    return %arg0, %c0_i32, %c0_i32_0 : i32, i32, i32
  }
}

</mosaic_0001>

<bundles_post_ra>
// kernel: maxpool2d_ceil.1
= control target key start
LH: loop header
LB: loop body
LE: loop exit
PB: predicated region body
PF: predicated region fallthrough
CT: control target
= control target key end

     0   :  { %6 = vsyncpa [#allocation4], 0  ;;  %s835_s0 = inlined_call_operand.hbm [shape: f32[8,16,16], index: 0, kind: input, shape index: {}]   ;;  %s836_s1 = inlined_call_operand.vmem [shape: f32[8,6,6], index: 1, kind: output, shape index: {}]  }
   0x1   :  { %8 = vsyncpa [#allocation4 + $0x1], 0  ;;  %s704_s6 = smov 0   ;;  %s706_s7 = smov 0  }
   0x2   :  { %s708_s8 = smov 0   ;;  %s710_s9 = smov 0  }
   0x3 LB: > { %s556_s10 = sadd.s32 4294967295, %s689_s9   ;;  %s724_s11 = sadd.s32 1, %s689_s9   ;;  %s689_s9 = sphi %s710_s9, %s843_s9   ;;  %s685_s8 = sphi %s708_s8, %s842_s8   ;;  %s681_s7 = sphi %s706_s7, %s841_s7   ;;  %s677_s6 = sphi %s704_s6, %s840_s6  }
   0x4   : > { %s18_s12 = ssub.s32 %s689_s9, %s724_s11  ;;  %s21_s13 = sadd.s32 1, %s685_s8 }
   0x5   : > { %p19_p0 = scmp.eq.s32.totalorder %s18_s12, 0  ;;  %p28_p1 = scmp.ne.s32.totalorder %s685_s8, %s681_s7 }
   0x6   : > { %p29_p2 = scmp.eq.s32.totalorder %s689_s9, 0  ;;  %p34_p3 = scmp.ne.s32.totalorder %s681_s7, %s677_s6 }
   0x7   : > { %s734_s14 = scalar_select %p19_p0, %s685_s8, %s21_s13  }
   0x8   : > { %p30_p4 = por %p29_p2, %p28_p1  ;;  %p35_p5 = scmp.eq.s32.totalorder %s556_s10, 0 }
   0x9   : > { %p589_p6 = scmp.lt.s32.totalorder %s689_s9, 2  ;;  %s84_s16 = sand.u32 1, %s685_s8  }
   0xa   : > { %p739_p7 = por %p35_p5, %p34_p3  ;;  %s560_s17 = sshll.u32 %s84_s16, 6 }
   0xb   : > { %s582_s18 = sshll.u32 %s689_s9, 10  ;;  %s88_s22 = scalar_lea.vmem [#allocation3], %s560_s17 }
   0xc   : > { %s748_s21 = scalar_lea.hbm %s835_s0, %s582_s18  ;;  %s96_s23 = sshll.u32 %s88_s22, 4  ;;  %s750_s23 = int_to_ptr.vmem [resolvable:$true] %s96_s23 }
   0xd   : > { %p752_p8 = pnand %p589_p6, %p30_p4  ;;  %s757_s25 = scalar_lea.sflag [#allocation4], %s84_s16 }
   0xe   : > { %s625_s26 = scalar_lea.hbm %s748_s21, 1024  ;;  %s630_s29 = scalar_lea.hbm %s835_s0, 2048 }
   0xf   : > { %p626_p10 = scmp.ne.s32.totalorder %s748_s21, %s625_s26  ;;  %p627_p11 = pneg %p752_p8 }
  0x10   : > { %p631_p0 = scmp.lt.u32.totalorder %s748_s21, %s835_s0  ;;  %p632_p1 = scmp.lt.u32.totalorder %s630_s29, %s625_s26 }
  0x11   : > { %p628_p12 = pnand %p627_p11, %p626_p10  ;;  %p634_p3 = scmp.lt.u32.totalorder %s625_s26, %s748_s21 }
  0x12   : > { %p633_p2 = por %p632_p1, %p631_p0 }
  0x13   : > { %p629_p13 = pneg %p628_p12 }
  0x14   : > { %p635_p4 = por %p634_p3, %p633_p2 }
  0x16   : > { %p636_p5 = pnand %p635_p4, %p629_p13 }
  0x18   : > { %639 = shalt.err (!%p636_p5)
}
  0x19   : > { %s640_s3 = scalar_lea.vmem %s750_s23, 1024  ;;  %s691_s4 = smov [#allocation3]  }
  0x1a   : > { %p641_p6 = scmp.ne.s32.totalorder %s750_s23, %s640_s3  ;;  %s645_s5 = sshll.u32 %s691_s4, 4  ;;  %s646_s5 = int_to_ptr.vmem [resolvable:$false] %s645_s5 }
  0x1b   : > { %s647_s6 = scalar_lea.vmem %s646_s5, 2048  ;;  %p648_p9 = scmp.lt.s32.totalorder %s750_s23, %s646_s5 }
  0x1c   : > { %p643_p10 = pnand %p641_p6, %p627_p11  ;;  %p649_p0 = scmp.lt.s32.totalorder %s647_s6, %s640_s3 }
  0x1e   : > { %p644_p12 = pneg %p643_p10  ;;  %p650_p1 = por %p649_p0, %p648_p9 }
  0x20   : > { %p651_p2 = pnand %p650_p1, %p644_p12 }
  0x22   : > { %654 = shalt.err (!%p651_p2)
}
  0x23   : > { %s692_s12 = smov 128   ;;  %s693_s13 = smov 8  }
  0x24   : > { %588 = dma.hbm_to_vmem [thread:$0]  (!%p752_p8), %s748_s21, 1024, %s750_s23, %s757_s25, %s692_s12, %s692_s12, %s693_s13  }
  0x25   : > { %p104_p11 = scmp.lt.s32.totalorder %s689_s9, 3  ;;  %p839_p13 = scmp.ge.s32.totalorder %s689_s9, 1 }
  0x27   : > { %p105_p3 = pnand %p839_p13, %p104_p11 }
  0x28   : > { %s110_s16 = sand.u32 (!%p105_p3), 1, %s681_s7  }
  0x29   : > { %108 = sbr.rel (%p105_p3) target bundleno = 346 (0x15a), region = 24  ;;  %s565_s17 = sshll.u32 (!%p105_p3), %s110_s16, 6 }
  0x2a   : > { %s111_s18 = scalar_lea.sflag (!%p105_p3), [#allocation4], %s110_s16  ;;  %s114_s19 = scalar_lea.vmem (!%p105_p3), [#allocation3], %s565_s17 }
  0x30   : > { %672 = dma.done.wait (%p739_p7), %s111_s18, 1024  }
  0x31   : > { %674 = vsyncadd (%p739_p7), %s111_s18, 4294966272  ;;  %vm155_vm0 = vcmask 1044480   ;;  %v569_v0 = vld [vmem:[%s114_s19 + $0x20] ss:$3 sm:$0x3f]  ;;  %vm308_vm1 = vcmask 48128  }
  0x32   : > { %v573_v1 = vld [vmem:[%s114_s19 + $0x21] ss:$3 sm:$0x1f]  ;;  %v577_v3 = vld [vmem:[%s114_s19 + $0x22] ss:$3 sm:$0x1f] }
  0x33   : > { %v158_v2 = vsel %vm155_vm0, %v573_v1, -inf  ;;  %v174_v5 = vsel %vm155_vm0, %v577_v3, -inf  ;;  %v140_v6 = vld [vmem:[%s114_s19] ss:$3 sm:$0x3f]  ;;  %s566_s15 = sshll.u32 %s556_s10, 2 }
  0x34   : > { %v162_v4 = vmax.f32 %v569_v0, %v158_v2  ;;  %v571_v7 = vld [vmem:[%s114_s19 + $0x1] ss:$3 sm:$0x1f]  ;;  %v575_v8 = vld [vmem:[%s114_s19 + $0x2] ss:$3 sm:$0x1f] }
  0x35   : > { %v156_v10 = vsel %vm155_vm0, %v571_v7, -inf  ;;  %v172_v11 = vsel %vm155_vm0, %v575_v8, -inf  ;;  %v570_v12 = vld [vmem:[%s114_s19 + $0x30] ss:$3 sm:$0x3f]  ;;  %p135_p7 = scmp.lt.s32.totalorder %s566_s15, 7 }
  0x36   : > { %v178_v9 = vmax.f32 %v162_v4, %v174_v5  ;;  %v160_v13 = vmax.f32 %v140_v6, %v156_v10  ;;  %v574_v14 = vld [vmem:[%s114_s19 + $0x31] ss:$3 sm:$0x1f]  ;;  %v578_v15 = vld [vmem:[%s114_s19 + $0x32] ss:$3 sm:$0x1f] }
  0x37   : > { %v159_v16 = vsel %vm155_vm0, %v574_v14, -inf  ;;  %v175_v17 = vsel %vm155_vm0, %v578_v15, -inf  ;;  %v568_v18 = vld [vmem:[%s114_s19 + $0x10] ss:$3 sm:$0x3f]  ;;  %s845_s15 = smov (!%p135_p7, %s566_s15), 7 }
  0x38   : > { %244 = vxpose.xlu1.b32.start.end [1/1] (short) (narrow) %v178_v9, 16  ;;  %v176_v19 = vmax.f32 %v160_v13, %v172_v11  ;;  %v163_v20 = vmax.f32 %v570_v12, %v159_v16  ;;  %v572_v21 = vld [vmem:[%s114_s19 + $0x11] ss:$3 sm:$0x1f]  ;;  %s567_s20 = sshll.u32 %s845_s15, 3  ;;  %vm484_vm2 = vcmask 46080  }
  0x39   : > { %v576_v22 = vld [vmem:[%s114_s19 + $0x12] ss:$3 sm:$0x1f]  ;;  %v157_v23 = vsel %vm155_vm0, %v572_v21, -inf  ;;  %s138_s23 = scalar_lea.vmem %s836_s1, %s567_s20 }
  0x3a   : > { %v173_v24 = vsel %vm155_vm0, %v576_v22, -inf  ;;  %180 = vxpose.xlu0.b32.start.end [1/1] (short) (narrow) %v176_v19, 16  ;;  %v179_v25 = vmax.f32 %v163_v20, %v175_v17  ;;  %v161_v26 = vmax.f32 %v568_v18, %v157_v23 }
  0x3c   : > { %v177_v27 = vmax.f32 %v161_v26, %v173_v24 }
  0x3d   : > { %276 = vxpose.xlu1.b32.start.end [1/1] (short) (narrow) %v179_v25, 16 }
  0x3f   : > { %212 = vxpose.xlu0.b32.start.end [1/1] (short) (narrow) %v177_v27, 16 }
  0xb8   : > { %v260_v28 = vpop.trf.xlu1 }
  0xb9   : > { %313 = vst.msk [vmem:[#allocation2 + $0x20] sm:$0xff] %vm308_vm1, %v260_v28 }
  0xba   : > { %v196_v29 = vpop.trf.xlu0 }
  0xbb   : > { %309 = vst.msk [vmem:[#allocation2] sm:$0xff] %vm308_vm1, %v196_v29 }
  0xbc   : > { %v261_v30 = vpop.trf.xlu1 }
  0xbd   : > { %314 = vst.msk [vmem:[#allocation2 + $0x28] sm:$0xff] %vm308_vm1, %v261_v30 }
  0xbe   : > { %v197_v31 = vpop.trf.xlu0 }
  0xbf   : > { %310 = vst.msk [vmem:[#allocation2 + $0x8] sm:$0xff] %vm308_vm1, %v197_v31 }
  0xc0   : > { %v292_v32 = vpop.trf.xlu1 }
  0xc1   : > { %315 = vst.msk [vmem:[#allocation2 + $0x30] sm:$0xff] %vm308_vm1, %v292_v32 }
  0xc2   : > { %v228_v33 = vpop.trf.xlu0 }
  0xc3   : > { %311 = vst.msk [vmem:[#allocation2 + $0x10] sm:$0xff] %vm308_vm1, %v228_v33 }
  0xc4   : > { %v293_v34 = vpop.trf.xlu1  ;;  %v329_v35 = vld [vmem:[#allocation2 + $0x21] ss:$3 sm:$0x1f]  ;;  %v321_v36 = vld [vmem:[#allocation2 + $0x20] ss:$3 sm:$0x3f] }
  0xc5   : > { %316 = vst.msk [vmem:[#allocation2 + $0x38] sm:$0xff] %vm308_vm1, %v293_v34  ;;  %v334_v42 = vsel %vm155_vm0, %v329_v35, -inf  ;;  %v345_v47 = vld [vmem:[#allocation2 + $0x22] ss:$3 sm:$0x1f] }
  0xc6   : > { %v229_v37 = vpop.trf.xlu0  ;;  %v317_v38 = vld [vmem:[#allocation2] ss:$3 sm:$0x3f]  ;;  %v325_v39 = vld [vmem:[#allocation2 + $0x1] ss:$3 sm:$0x1f]  ;;  %v338_v46 = vmax.f32 %v321_v36, %v334_v42 }
  0xc7   : > { %312 = vst.msk [vmem:[#allocation2 + $0x18] sm:$0xff] %vm308_vm1, %v229_v37  ;;  %v332_v40 = vsel %vm155_vm0, %v325_v39, -inf  ;;  %v341_v41 = vld [vmem:[#allocation2 + $0x2] ss:$3 sm:$0x1f]  ;;  %v350_v49 = vsel %vm155_vm0, %v345_v47, -inf }
  0xc8   : > { %v336_v43 = vmax.f32 %v317_v38, %v332_v40  ;;  %v348_v44 = vsel %vm155_vm0, %v341_v41, -inf  ;;  %v354_v51 = vmax.f32 %v338_v46, %v350_v49 }
  0xca   : > { %v352_v45 = vmax.f32 %v336_v43, %v348_v44 }
  0xcc   : > { %356 = vxpose.xlu0.b32.start.end [1/1] (short) (narrow) %v352_v45, 8  ;;  %v331_v48 = vld [vmem:[#allocation2 + $0x31] ss:$3 sm:$0x1f] }
  0xcd   : > { %v323_v50 = vld [vmem:[#allocation2 + $0x30] ss:$3 sm:$0x3f]  ;;  %v335_v56 = vsel %vm155_vm0, %v331_v48, -inf }
  0xce   : > { %v319_v52 = vld [vmem:[#allocation2 + $0x10] ss:$3 sm:$0x3f]  ;;  %v327_v53 = vld [vmem:[#allocation2 + $0x11] ss:$3 sm:$0x1f]  ;;  %v339_v60 = vmax.f32 %v323_v50, %v335_v56 }
  0xcf   : > { %v333_v54 = vsel %vm155_vm0, %v327_v53, -inf  ;;  %v343_v55 = vld [vmem:[#allocation2 + $0x12] ss:$3 sm:$0x1f] }
  0xd0   : > { %420 = vxpose.xlu0.b32.start.end [1/1] (short) (narrow) %v354_v51, 8  ;;  %v337_v57 = vmax.f32 %v319_v52, %v333_v54  ;;  %v349_v58 = vsel %vm155_vm0, %v343_v55, -inf  ;;  %v347_v61 = vld [vmem:[#allocation2 + $0x32] ss:$3 sm:$0x1f] }
  0xd1   : > { %v351_v62 = vsel %vm155_vm0, %v347_v61, -inf }
  0xd2   : > { %v353_v59 = vmax.f32 %v337_v57, %v349_v58  ;;  %v355_v63 = vmax.f32 %v339_v60, %v351_v62 }
  0xd4   : > { %388 = vxpose.xlu1.b32.start.end [1/1] (short) (narrow) %v353_v59, 8 }
  0xd8   : > { %452 = vxpose.xlu1.b32.start.end [1/1] (short) (narrow) %v355_v63, 8 }
 0x14c   : > { %v372_v0 = vpop.trf.xlu0 }
 0x14d   : > { %485 = vst.msk [vmem:[%s138_s23] sm:$0x3f] %vm484_vm2, %v372_v0 }
 0x150   : > { %v436_v1 = vpop.trf.xlu0 }
 0x151   : > { %487 = vst.msk [vmem:[%s138_s23 + $0x10] sm:$0x3f] %vm484_vm2, %v436_v1 }
 0x154   : > { %v404_v2 = vpop.trf.xlu1 }
 0x155   : > { %486 = vst.msk [vmem:[%s138_s23 + $0x8] sm:$0x3f] %vm484_vm2, %v404_v2 }
 0x158   : > { %v468_v3 = vpop.trf.xlu1 }
 0x159   : > { %488 = vst.msk [vmem:[%s138_s23 + $0x18] sm:$0x3f] %vm484_vm2, %v468_v3 }
 0x15a PF: > { %p11_p8 = scmp.ge.s32.totalorder %s724_s11, 4   ;;  %s840_s6 = smov %s681_s7 }
 0x15b   : > { %s841_s7 = smov %s685_s8  ;;  %s842_s8 = smov %s734_s14 }
 0x15c   : > { %s843_s9 = smov %s724_s11  ;;  %13 = sbr.rel (!%p11_p8) target bundleno = 3 (0x3), region = 86 }
 0x163   :  { %511 = vsyncpa [#allocation4], 1 }
 0x164   :  { %513 = vsyncpa [#allocation4 + $0x1], 1 }

</bundles_post_ra>
